<compile_context>
chip_gen: v6e
topology: v6e:2x2x1
jax: 0.10.0
libtpu: 0.0.40
codegen_flags: <defaults>
</compile_context>

<pallas_src>
import functools
import math

import jax
import jax.numpy as jnp
import numpy as np
from jax.experimental import pallas as pl
from jax.experimental.pallas import tpu as pltpu

# ----------------------------- config ---------------------------------------
B = 2          # batch
T = 8          # latent sequence length
N = 8          # text / modality sequence length
LATENT_DIM = 32
MOD_DIM = 32
NUM_HEAD = 4
HEAD_DIM = LATENT_DIM // NUM_HEAD
LN_EPS = 1e-5


# ----------------------------- kernel ---------------------------------------
def _layer_norm(v, gamma, beta):
    # v: (..., D) f32; gamma/beta: (1, D) — broadcasts over leading dims.
    mu = jnp.mean(v, axis=-1, keepdims=True)
    var = jnp.mean((v - mu) ** 2, axis=-1, keepdims=True)
    return (v - mu) * jax.lax.rsqrt(var + LN_EPS) * gamma + beta


def tca_kernel(num_head,
               x_ref,        # (B*T, D)
               xf_ref,       # (B*N, Dm)
               wq_ref,       # (D, D)      = Wq.T   (pre-transposed)
               wkv_ref,      # (Dm, 2D)    = [Wk.T | Wv.T] (fused, pre-transposed)
               lnl_ref,      # (4, D)      = [g1; b1; g3; b3]
               lnm_ref,      # (2, Dm)     = [g2; b2]
               o_ref,        # (B, T, D)
               y_ref):       # VMEM scratch (B, T, D) f32 for concat-free head writes
    Bb, Tt, D = o_ref.shape
    Nn = xf_ref.shape[0] // Bb
    Dh = D // num_head

    x2 = x_ref[...].astype(jnp.float32)       # (B*T, D)
    xf2 = xf_ref[...].astype(jnp.float32)     # (B*N, Dm)

    lnl = lnl_ref[...]                        # (4, D)
    lnm = lnm_ref[...]                        # (2, Dm)
    g1, b1 = lnl[0:1, :], lnl[1:2, :]
    g3, b3 = lnl[2:3, :], lnl[3:4, :]
    g2, b2 = lnm[0:1, :], lnm[1:2, :]

    xn = _layer_norm(x2, g1, b1)              # (B*T, D)
    xfn = _layer_norm(xf2, g2, b2)            # (B*N, Dm)

    # Projections (weights already transposed to (in, out); K/V fused).
    q = jnp.dot(xn, wq_ref[...], preferred_element_type=jnp.float32)     # (B*T, D)
    kv = jnp.dot(xfn, wkv_ref[...], preferred_element_type=jnp.float32)  # (B*N, 2D)

    # Split the leading row dim back into (batch, seq); lane layout untouched.
    q3 = q.reshape(Bb, Tt, D)
    k3 = kv[:, :D].reshape(Bb, Nn, D)
    v3 = kv[:, D:].reshape(Bb, Nn, D)

    scale = 1.0 / math.sqrt(D // num_head)

    # Per-head attention, batched over the batch dim via einsum (2 batched
    # dot_generals per head instead of 2 per (batch, head)).
    for h in range(num_head):
        lo, hi = h * Dh, (h + 1) * Dh
        qh = q3[:, :, lo:hi]                  # (B, T, Dh)
        kh = k3[:, :, lo:hi]                  # (B, N, Dh)
        vh = v3[:, :, lo:hi]                  # (B, N, Dh)

        s = jnp.einsum('btd,bnd->btn', qh, kh,
                       preferred_element_type=jnp.float32) * scale       # (B, T, N)
        s = s - jnp.max(s, axis=-1, keepdims=True)
        e = jnp.exp(s)
        inv = pl.reciprocal(jnp.sum(e, axis=-1, keepdims=True), approx=False)
        w = e * inv                                                       # softmax over N
        # TODO(synk): dropout on attention weights is identity in eval mode;
        # training-mode dropout (RNG mask) is intentionally omitted.

        oh = jnp.einsum('btn,bnd->btd', w, vh,
                        preferred_element_type=jnp.float32)               # (B, T, Dh)
        y_ref[:, :, lo:hi] = oh               # write head slab (no lane concat)

    x3 = x2.reshape(Bb, Tt, D)
    out = _layer_norm(x3 + y_ref[...], g3, b3)
    o_ref[...] = out.astype(o_ref.dtype)


# ----------------------------- wrapper ---------------------------------------
def temporal_cross_attention(x, xf, params):
    Bx, Tx, D = x.shape
    _, Nx, Dm = xf.shape

    # One-time host-side weight prep: pre-transpose, fuse K/V, pack LN params.
    wq_t = params["wq"].T                                                # (D, D)
    wkv_t = jnp.concatenate([params["wk"].T, params["wv"].T], axis=1)    # (Dm, 2D)
    ln_lat = jnp.concatenate([params["g1"], params["b1"],
                              params["g3"], params["b3"]], axis=0)       # (4, D)
    ln_mod = jnp.concatenate([params["g2"], params["b2"]], axis=0)       # (2, Dm)

    # Fold batch into the matmul M dimension -> single grid step.
    x2 = x.reshape(Bx * Tx, D)
    xf2 = xf.reshape(Bx * Nx, Dm)

    def full(shape):
        return pl.BlockSpec(shape, lambda i, _s=shape: tuple(0 for _ in _s))

    kernel = functools.partial(tca_kernel, NUM_HEAD)

    return pl.pallas_call(
        kernel,
        out_shape=jax.ShapeDtypeStruct((Bx, Tx, D), x.dtype),
        grid=(1,),
        in_specs=[
            full((Bx * Tx, D)),      # x  (rows)
            full((Bx * Nx, Dm)),     # xf (rows)
            full((D, D)),            # Wq^T
            full((Dm, 2 * D)),       # [Wk^T | Wv^T]
            full((4, D)),            # packed latent LN params
            full((2, Dm)),           # packed mod LN params
        ],
        out_specs=full((Bx, Tx, D)),
        scratch_shapes=[pltpu.VMEM((Bx, Tx, D), jnp.float32)],
        compiler_params=pltpu.CompilerParams(
            dimension_semantics=("arbitrary",)),
    )(x2, xf2, wq_t, wkv_t, ln_lat, ln_mod)


# ----------------------------- pure-JAX reference ----------------------------
def reference(x, xf, params):
    def ln(v, g, b):
        mu = v.mean(-1, keepdims=True)
        var = ((v - mu) ** 2).mean(-1, keepdims=True)
        return (v - mu) / jnp.sqrt(var + LN_EPS) * g + b

    Bx, Tx, D = x.shape
    Nx = xf.shape[1]
    H, Dh = NUM_HEAD, HEAD_DIM

    xn = ln(x, params["g1"][0], params["b1"][0])
    xfn = ln(xf, params["g2"][0], params["b2"][0])
    q = (xn @ params["wq"].T).reshape(Bx, Tx, H, Dh)
    k = (xfn @ params["wk"].T).reshape(Bx, Nx, H, Dh)
    v = (xfn @ params["wv"].T).reshape(Bx, Nx, H, Dh)
    attn = jnp.einsum("bnhd,bmhd->bnmh", q, k) / math.sqrt(D // H)
    w = jax.nn.softmax(attn, axis=2)
    y = jnp.einsum("bnmh,bmhd->bnhd", w, v).reshape(Bx, Tx, D)
    return ln(x + y, params["g3"][0], params["b3"][0])


# ----------------------------- main ------------------------------------------
if __name__ == "__main__":
    key = jax.random.PRNGKey(0)
    kx, kxf, kq, kk, kv = jax.random.split(key, 5)

    x = jax.random.normal(kx, (B, T, LATENT_DIM), dtype=jnp.float32)
    xf = jax.random.normal(kxf, (B, N, MOD_DIM), dtype=jnp.float32)

    params = {
        # nn.Linear weights: (out_features, in_features), bias=False
        "wq": 0.05 * jax.random.normal(kq, (LATENT_DIM, LATENT_DIM), jnp.float32),
        "wk": 0.05 * jax.random.normal(kk, (LATENT_DIM, MOD_DIM), jnp.float32),
        "wv": 0.05 * jax.random.normal(kv, (LATENT_DIM, MOD_DIM), jnp.float32),
        # LayerNorm params (PyTorch default init: weight=1, bias=0), kept 2D
        "g1": jnp.ones((1, LATENT_DIM), jnp.float32),
        "b1": jnp.zeros((1, LATENT_DIM), jnp.float32),
        "g2": jnp.ones((1, MOD_DIM), jnp.float32),
        "b2": jnp.zeros((1, MOD_DIM), jnp.float32),
        "g3": jnp.ones((1, LATENT_DIM), jnp.float32),
        "b3": jnp.zeros((1, LATENT_DIM), jnp.float32),
    }

    out = temporal_cross_attention(x, xf, params)
    out = jax.block_until_ready(out)

    ref = jax.block_until_ready(reference(x, xf, params))
    np.testing.assert_allclose(np.asarray(out), np.asarray(ref),
                               rtol=1e-4, atol=1e-4)
    print("KERNEL_OK")
</pallas_src>

<mosaic_0001>
module attributes {stable_mosaic.version = 11 : i64} {
  func.func @tca_kernel(%arg0: i32, %arg1: memref<16x32xf32, #tpu.memory_space<vmem>>, %arg2: memref<16x32xf32, #tpu.memory_space<vmem>>, %arg3: memref<32x32xf32, #tpu.memory_space<vmem>>, %arg4: memref<32x64xf32, #tpu.memory_space<vmem>>, %arg5: memref<4x32xf32, #tpu.memory_space<vmem>>, %arg6: memref<2x32xf32, #tpu.memory_space<vmem>>, %arg7: memref<2x8x32xf32, #tpu.memory_space<vmem>>, %arg8: memref<2x8x32xf32, #tpu.memory_space<vmem>>) attributes {dimension_semantics = [#tpu.dimension_semantics<arbitrary>], iteration_bounds = array<i64: 1>, scalar_prefetch = 0 : i64, scratch_operands = 1 : i64, tpu.core_type = #tpu.core_type<tc>, window_params = [{pipeline_mode = #tpu.pipeline_mode<synchronous>, transform_indices = @transform_0, window_bounds = array<i64: 16, 32>}, {pipeline_mode = #tpu.pipeline_mode<synchronous>, transform_indices = @transform_1, window_bounds = array<i64: 16, 32>}, {pipeline_mode = #tpu.pipeline_mode<synchronous>, transform_indices = @transform_2, window_bounds = array<i64: 32, 32>}, {pipeline_mode = #tpu.pipeline_mode<synchronous>, transform_indices = @transform_3, window_bounds = array<i64: 32, 64>}, {pipeline_mode = #tpu.pipeline_mode<synchronous>, transform_indices = @transform_4, window_bounds = array<i64: 4, 32>}, {pipeline_mode = #tpu.pipeline_mode<synchronous>, transform_indices = @transform_5, window_bounds = array<i64: 2, 32>}, {pipeline_mode = #tpu.pipeline_mode<synchronous>, transform_indices = @transform_6, window_bounds = array<i64: 2, 8, 32>}]} {
    %c0 = arith.constant 0 : index
    %c0_0 = arith.constant 0 : index
    %0 = vector.load %arg1[%c0, %c0_0] : memref<16x32xf32, #tpu.memory_space<vmem>>, vector<16x32xf32>
    %c0_1 = arith.constant 0 : index
    %c0_2 = arith.constant 0 : index
    %1 = vector.load %arg2[%c0_1, %c0_2] : memref<16x32xf32, #tpu.memory_space<vmem>>, vector<16x32xf32>
    %c0_3 = arith.constant 0 : index
    %c0_4 = arith.constant 0 : index
    %2 = vector.load %arg5[%c0_3, %c0_4] : memref<4x32xf32, #tpu.memory_space<vmem>>, vector<4x32xf32>
    %c0_5 = arith.constant 0 : index
    %c0_6 = arith.constant 0 : index
    %3 = vector.load %arg6[%c0_5, %c0_6] : memref<2x32xf32, #tpu.memory_space<vmem>>, vector<2x32xf32>
    %4 = vector.extract_strided_slice %2 {offsets = [0, 0], sizes = [1, 32], strides = [1, 1]} : vector<4x32xf32> to vector<1x32xf32>
    %5 = vector.extract_strided_slice %2 {offsets = [1, 0], sizes = [1, 32], strides = [1, 1]} : vector<4x32xf32> to vector<1x32xf32>
    %6 = vector.extract_strided_slice %2 {offsets = [2, 0], sizes = [1, 32], strides = [1, 1]} : vector<4x32xf32> to vector<1x32xf32>
    %7 = vector.extract_strided_slice %2 {offsets = [3, 0], sizes = [1, 32], strides = [1, 1]} : vector<4x32xf32> to vector<1x32xf32>
    %8 = vector.extract_strided_slice %3 {offsets = [0, 0], sizes = [1, 32], strides = [1, 1]} : vector<2x32xf32> to vector<1x32xf32>
    %9 = vector.extract_strided_slice %3 {offsets = [1, 0], sizes = [1, 32], strides = [1, 1]} : vector<2x32xf32> to vector<1x32xf32>
    %cst = arith.constant dense<0.000000e+00> : vector<16xf32>
    %10 = vector.multi_reduction <add>, %0, %cst [1] : vector<16x32xf32> to vector<16xf32>
    %11 = vector.shape_cast %10 : vector<16xf32> to vector<16x1xf32>
    %cst_7 = arith.constant 3.200000e+01 : f32
    %12 = vector.broadcast %cst_7 : f32 to vector<16x1xf32>
    %13 = arith.divf %11, %12 : vector<16x1xf32>
    %14 = vector.broadcast %13 : vector<16x1xf32> to vector<16x32xf32>
    %15 = arith.subf %0, %14 : vector<16x32xf32>
    %16 = arith.mulf %15, %15 : vector<16x32xf32>
    %cst_8 = arith.constant dense<0.000000e+00> : vector<16xf32>
    %17 = vector.multi_reduction <add>, %16, %cst_8 [1] : vector<16x32xf32> to vector<16xf32>
    %18 = vector.shape_cast %17 : vector<16xf32> to vector<16x1xf32>
    %cst_9 = arith.constant 3.200000e+01 : f32
    %19 = vector.broadcast %cst_9 : f32 to vector<16x1xf32>
    %20 = arith.divf %18, %19 : vector<16x1xf32>
    %21 = vector.broadcast %13 : vector<16x1xf32> to vector<16x32xf32>
    %22 = arith.subf %0, %21 : vector<16x32xf32>
    %cst_10 = arith.constant 9.99999974E-6 : f32
    %23 = vector.broadcast %cst_10 : f32 to vector<16x1xf32>
    %24 = arith.addf %20, %23 : vector<16x1xf32>
    %25 = math.rsqrt %24 : vector<16x1xf32>
    %26 = vector.broadcast %25 : vector<16x1xf32> to vector<16x32xf32>
    %27 = arith.mulf %22, %26 : vector<16x32xf32>
    %28 = vector.broadcast %4 : vector<1x32xf32> to vector<16x32xf32>
    %29 = arith.mulf %27, %28 : vector<16x32xf32>
    %30 = vector.broadcast %5 : vector<1x32xf32> to vector<16x32xf32>
    %31 = arith.addf %29, %30 : vector<16x32xf32>
    %cst_11 = arith.constant dense<0.000000e+00> : vector<16xf32>
    %32 = vector.multi_reduction <add>, %1, %cst_11 [1] : vector<16x32xf32> to vector<16xf32>
    %33 = vector.shape_cast %32 : vector<16xf32> to vector<16x1xf32>
    %cst_12 = arith.constant 3.200000e+01 : f32
    %34 = vector.broadcast %cst_12 : f32 to vector<16x1xf32>
    %35 = arith.divf %33, %34 : vector<16x1xf32>
    %36 = vector.broadcast %35 : vector<16x1xf32> to vector<16x32xf32>
    %37 = arith.subf %1, %36 : vector<16x32xf32>
    %38 = arith.mulf %37, %37 : vector<16x32xf32>
    %cst_13 = arith.constant dense<0.000000e+00> : vector<16xf32>
    %39 = vector.multi_reduction <add>, %38, %cst_13 [1] : vector<16x32xf32> to vector<16xf32>
    %40 = vector.shape_cast %39 : vector<16xf32> to vector<16x1xf32>
    %cst_14 = arith.constant 3.200000e+01 : f32
    %41 = vector.broadcast %cst_14 : f32 to vector<16x1xf32>
    %42 = arith.divf %40, %41 : vector<16x1xf32>
    %43 = vector.broadcast %35 : vector<16x1xf32> to vector<16x32xf32>
    %44 = arith.subf %1, %43 : vector<16x32xf32>
    %cst_15 = arith.constant 9.99999974E-6 : f32
    %45 = vector.broadcast %cst_15 : f32 to vector<16x1xf32>
    %46 = arith.addf %42, %45 : vector<16x1xf32>
    %47 = math.rsqrt %46 : vector<16x1xf32>
    %48 = vector.broadcast %47 : vector<16x1xf32> to vector<16x32xf32>
    %49 = arith.mulf %44, %48 : vector<16x32xf32>
    %50 = vector.broadcast %8 : vector<1x32xf32> to vector<16x32xf32>
    %51 = arith.mulf %49, %50 : vector<16x32xf32>
    %52 = vector.broadcast %9 : vector<1x32xf32> to vector<16x32xf32>
    %53 = arith.addf %51, %52 : vector<16x32xf32>
    %c0_16 = arith.constant 0 : index
    %c0_17 = arith.constant 0 : index
    %54 = vector.load %arg3[%c0_16, %c0_17] : memref<32x32xf32, #tpu.memory_space<vmem>>, vector<32x32xf32>
    %cst_18 = arith.constant dense<0.000000e+00> : vector<16x32xf32>
    %55 = tpu.matmul %31, %54, %cst_18 {dimension_numbers = #tpu.dot_dimension_numbers<[1], [0], [0], [1], [0, 0, 1, 1], [], []>} : vector<16x32xf32>, vector<32x32xf32>, vector<16x32xf32> -> vector<16x32xf32>
    %c0_19 = arith.constant 0 : index
    %c0_20 = arith.constant 0 : index
    %56 = vector.load %arg4[%c0_19, %c0_20] : memref<32x64xf32, #tpu.memory_space<vmem>>, vector<32x64xf32>
    %cst_21 = arith.constant dense<0.000000e+00> : vector<16x64xf32>
    %57 = tpu.matmul %53, %56, %cst_21 {dimension_numbers = #tpu.dot_dimension_numbers<[1], [0], [0], [1], [0, 0, 1, 1], [], []>} : vector<16x32xf32>, vector<32x64xf32>, vector<16x64xf32> -> vector<16x64xf32>
    %58 = vector.shape_cast %55 : vector<16x32xf32> to vector<2x8x32xf32>
    %59 = vector.extract_strided_slice %57 {offsets = [0, 0], sizes = [16, 32], strides = [1, 1]} : vector<16x64xf32> to vector<16x32xf32>
    %60 = vector.shape_cast %59 : vector<16x32xf32> to vector<2x8x32xf32>
    %61 = vector.extract_strided_slice %57 {offsets = [0, 32], sizes = [16, 32], strides = [1, 1]} : vector<16x64xf32> to vector<16x32xf32>
    %62 = vector.shape_cast %61 : vector<16x32xf32> to vector<2x8x32xf32>
    %63 = vector.extract_strided_slice %58 {offsets = [0, 0, 0], sizes = [2, 8, 8], strides = [1, 1, 1]} : vector<2x8x32xf32> to vector<2x8x8xf32>
    %64 = vector.extract_strided_slice %60 {offsets = [0, 0, 0], sizes = [2, 8, 8], strides = [1, 1, 1]} : vector<2x8x32xf32> to vector<2x8x8xf32>
    %65 = vector.extract_strided_slice %62 {offsets = [0, 0, 0], sizes = [2, 8, 8], strides = [1, 1, 1]} : vector<2x8x32xf32> to vector<2x8x8xf32>
    "tpu.trace_start"() <{level = 10 : i32, message = "btd,bnd->btn"}> : () -> ()
    %cst_22 = arith.constant dense<0.000000e+00> : vector<2x8x8xf32>
    %66 = tpu.matmul %63, %64, %cst_22 {dimension_numbers = #tpu.dot_dimension_numbers<[2], [2], [1], [1], [0, 0, 0, 1, 1, 1], [0], [0]>} : vector<2x8x8xf32>, vector<2x8x8xf32>, vector<2x8x8xf32> -> vector<2x8x8xf32>
    "tpu.trace_stop"() : () -> ()
    %cst_23 = arith.constant 0.353553385 : f32
    %67 = vector.broadcast %cst_23 : f32 to vector<2x8x8xf32>
    %68 = arith.mulf %66, %67 : vector<2x8x8xf32>
    %cst_24 = arith.constant dense<0xFF800000> : vector<2x8xf32>
    %69 = vector.multi_reduction <maximumf>, %68, %cst_24 [2] : vector<2x8x8xf32> to vector<2x8xf32>
    %70 = vector.shape_cast %69 : vector<2x8xf32> to vector<2x8x1xf32>
    %71 = vector.broadcast %70 : vector<2x8x1xf32> to vector<2x8x8xf32>
    %72 = arith.subf %68, %71 : vector<2x8x8xf32>
    %73 = math.exp %72 : vector<2x8x8xf32>
    %cst_25 = arith.constant dense<0.000000e+00> : vector<2x8xf32>
    %74 = vector.multi_reduction <add>, %73, %cst_25 [2] : vector<2x8x8xf32> to vector<2x8xf32>
    %75 = vector.shape_cast %74 : vector<2x8xf32> to vector<2x8x1xf32>
    %76 = tpu.reciprocal %75 : vector<2x8x1xf32> -> vector<2x8x1xf32>
    %77 = vector.broadcast %76 : vector<2x8x1xf32> to vector<2x8x8xf32>
    %78 = arith.mulf %73, %77 : vector<2x8x8xf32>
    "tpu.trace_start"() <{level = 10 : i32, message = "btn,bnd->btd"}> : () -> ()
    %cst_26 = arith.constant dense<0.000000e+00> : vector<2x8x8xf32>
    %79 = tpu.matmul %78, %65, %cst_26 {dimension_numbers = #tpu.dot_dimension_numbers<[2], [1], [1], [2], [0, 0, 0, 1, 1, 2], [0], [0]>} : vector<2x8x8xf32>, vector<2x8x8xf32>, vector<2x8x8xf32> -> vector<2x8x8xf32>
    "tpu.trace_stop"() : () -> ()
    %c0_27 = arith.constant 0 : index
    %c0_28 = arith.constant 0 : index
    %c0_29 = arith.constant 0 : index
    %80 = vector.load %arg8[%c0_27, %c0_28, %c0_29] : memref<2x8x32xf32, #tpu.memory_space<vmem>>, vector<2x8x8xf32>
    tpu.vector_store %arg8[%c0_27, %c0_28, %c0_29], %79 {strides = array<i32>} : memref<2x8x32xf32, #tpu.memory_space<vmem>>, vector<2x8x8xf32>,
    %81 = vector.extract_strided_slice %58 {offsets = [0, 0, 8], sizes = [2, 8, 8], strides = [1, 1, 1]} : vector<2x8x32xf32> to vector<2x8x8xf32>
    %82 = vector.extract_strided_slice %60 {offsets = [0, 0, 8], sizes = [2, 8, 8], strides = [1, 1, 1]} : vector<2x8x32xf32> to vector<2x8x8xf32>
    %83 = vector.extract_strided_slice %62 {offsets = [0, 0, 8], sizes = [2, 8, 8], strides = [1, 1, 1]} : vector<2x8x32xf32> to vector<2x8x8xf32>
    "tpu.trace_start"() <{level = 10 : i32, message = "btd,bnd->btn"}> : () -> ()
    %cst_30 = arith.constant dense<0.000000e+00> : vector<2x8x8xf32>
    %84 = tpu.matmul %81, %82, %cst_30 {dimension_numbers = #tpu.dot_dimension_numbers<[2], [2], [1], [1], [0, 0, 0, 1, 1, 1], [0], [0]>} : vector<2x8x8xf32>, vector<2x8x8xf32>, vector<2x8x8xf32> -> vector<2x8x8xf32>
    "tpu.trace_stop"() : () -> ()
    %cst_31 = arith.constant 0.353553385 : f32
    %85 = vector.broadcast %cst_31 : f32 to vector<2x8x8xf32>
    %86 = arith.mulf %84, %85 : vector<2x8x8xf32>
    %cst_32 = arith.constant dense<0xFF800000> : vector<2x8xf32>
    %87 = vector.multi_reduction <maximumf>, %86, %cst_32 [2] : vector<2x8x8xf32> to vector<2x8xf32>
    %88 = vector.shape_cast %87 : vector<2x8xf32> to vector<2x8x1xf32>
    %89 = vector.broadcast %88 : vector<2x8x1xf32> to vector<2x8x8xf32>
    %90 = arith.subf %86, %89 : vector<2x8x8xf32>
    %91 = math.exp %90 : vector<2x8x8xf32>
    %cst_33 = arith.constant dense<0.000000e+00> : vector<2x8xf32>
    %92 = vector.multi_reduction <add>, %91, %cst_33 [2] : vector<2x8x8xf32> to vector<2x8xf32>
    %93 = vector.shape_cast %92 : vector<2x8xf32> to vector<2x8x1xf32>
    %94 = tpu.reciprocal %93 : vector<2x8x1xf32> -> vector<2x8x1xf32>
    %95 = vector.broadcast %94 : vector<2x8x1xf32> to vector<2x8x8xf32>
    %96 = arith.mulf %91, %95 : vector<2x8x8xf32>
    "tpu.trace_start"() <{level = 10 : i32, message = "btn,bnd->btd"}> : () -> ()
    %cst_34 = arith.constant dense<0.000000e+00> : vector<2x8x8xf32>
    %97 = tpu.matmul %96, %83, %cst_34 {dimension_numbers = #tpu.dot_dimension_numbers<[2], [1], [1], [2], [0, 0, 0, 1, 1, 2], [0], [0]>} : vector<2x8x8xf32>, vector<2x8x8xf32>, vector<2x8x8xf32> -> vector<2x8x8xf32>
    "tpu.trace_stop"() : () -> ()
    %c0_35 = arith.constant 0 : index
    %c0_36 = arith.constant 0 : index
    %c8 = arith.constant 8 : index
    %98 = vector.load %arg8[%c0_35, %c0_36, %c8] : memref<2x8x32xf32, #tpu.memory_space<vmem>>, vector<2x8x8xf32>
    tpu.vector_store %arg8[%c0_35, %c0_36, %c8], %97 {strides = array<i32>} : memref<2x8x32xf32, #tpu.memory_space<vmem>>, vector<2x8x8xf32>,
    %99 = vector.extract_strided_slice %58 {offsets = [0, 0, 16], sizes = [2, 8, 8], strides = [1, 1, 1]} : vector<2x8x32xf32> to vector<2x8x8xf32>
    %100 = vector.extract_strided_slice %60 {offsets = [0, 0, 16], sizes = [2, 8, 8], strides = [1, 1, 1]} : vector<2x8x32xf32> to vector<2x8x8xf32>
    %101 = vector.extract_strided_slice %62 {offsets = [0, 0, 16], sizes = [2, 8, 8], strides = [1, 1, 1]} : vector<2x8x32xf32> to vector<2x8x8xf32>
    "tpu.trace_start"() <{level = 10 : i32, message = "btd,bnd->btn"}> : () -> ()
    %cst_37 = arith.constant dense<0.000000e+00> : vector<2x8x8xf32>
    %102 = tpu.matmul %99, %100, %cst_37 {dimension_numbers = #tpu.dot_dimension_numbers<[2], [2], [1], [1], [0, 0, 0, 1, 1, 1], [0], [0]>} : vector<2x8x8xf32>, vector<2x8x8xf32>, vector<2x8x8xf32> -> vector<2x8x8xf32>
    "tpu.trace_stop"() : () -> ()
    %cst_38 = arith.constant 0.353553385 : f32
    %103 = vector.broadcast %cst_38 : f32 to vector<2x8x8xf32>
    %104 = arith.mulf %102, %103 : vector<2x8x8xf32>
    %cst_39 = arith.constant dense<0xFF800000> : vector<2x8xf32>
    %105 = vector.multi_reduction <maximumf>, %104, %cst_39 [2] : vector<2x8x8xf32> to vector<2x8xf32>
    %106 = vector.shape_cast %105 : vector<2x8xf32> to vector<2x8x1xf32>
    %107 = vector.broadcast %106 : vector<2x8x1xf32> to vector<2x8x8xf32>
    %108 = arith.subf %104, %107 : vector<2x8x8xf32>
    %109 = math.exp %108 : vector<2x8x8xf32>
    %cst_40 = arith.constant dense<0.000000e+00> : vector<2x8xf32>
    %110 = vector.multi_reduction <add>, %109, %cst_40 [2] : vector<2x8x8xf32> to vector<2x8xf32>
    %111 = vector.shape_cast %110 : vector<2x8xf32> to vector<2x8x1xf32>
    %112 = tpu.reciprocal %111 : vector<2x8x1xf32> -> vector<2x8x1xf32>
    %113 = vector.broadcast %112 : vector<2x8x1xf32> to vector<2x8x8xf32>
    %114 = arith.mulf %109, %113 : vector<2x8x8xf32>
    "tpu.trace_start"() <{level = 10 : i32, message = "btn,bnd->btd"}> : () -> ()
    %cst_41 = arith.constant dense<0.000000e+00> : vector<2x8x8xf32>
    %115 = tpu.matmul %114, %101, %cst_41 {dimension_numbers = #tpu.dot_dimension_numbers<[2], [1], [1], [2], [0, 0, 0, 1, 1, 2], [0], [0]>} : vector<2x8x8xf32>, vector<2x8x8xf32>, vector<2x8x8xf32> -> vector<2x8x8xf32>
    "tpu.trace_stop"() : () -> ()
    %c0_42 = arith.constant 0 : index
    %c0_43 = arith.constant 0 : index
    %c16 = arith.constant 16 : index
    %116 = vector.load %arg8[%c0_42, %c0_43, %c16] : memref<2x8x32xf32, #tpu.memory_space<vmem>>, vector<2x8x8xf32>
    tpu.vector_store %arg8[%c0_42, %c0_43, %c16], %115 {strides = array<i32>} : memref<2x8x32xf32, #tpu.memory_space<vmem>>, vector<2x8x8xf32>,
    %117 = vector.extract_strided_slice %58 {offsets = [0, 0, 24], sizes = [2, 8, 8], strides = [1, 1, 1]} : vector<2x8x32xf32> to vector<2x8x8xf32>
    %118 = vector.extract_strided_slice %60 {offsets = [0, 0, 24], sizes = [2, 8, 8], strides = [1, 1, 1]} : vector<2x8x32xf32> to vector<2x8x8xf32>
    %119 = vector.extract_strided_slice %62 {offsets = [0, 0, 24], sizes = [2, 8, 8], strides = [1, 1, 1]} : vector<2x8x32xf32> to vector<2x8x8xf32>
    "tpu.trace_start"() <{level = 10 : i32, message = "btd,bnd->btn"}> : () -> ()
    %cst_44 = arith.constant dense<0.000000e+00> : vector<2x8x8xf32>
    %120 = tpu.matmul %117, %118, %cst_44 {dimension_numbers = #tpu.dot_dimension_numbers<[2], [2], [1], [1], [0, 0, 0, 1, 1, 1], [0], [0]>} : vector<2x8x8xf32>, vector<2x8x8xf32>, vector<2x8x8xf32> -> vector<2x8x8xf32>
    "tpu.trace_stop"() : () -> ()
    %cst_45 = arith.constant 0.353553385 : f32
    %121 = vector.broadcast %cst_45 : f32 to vector<2x8x8xf32>
    %122 = arith.mulf %120, %121 : vector<2x8x8xf32>
    %cst_46 = arith.constant dense<0xFF800000> : vector<2x8xf32>
    %123 = vector.multi_reduction <maximumf>, %122, %cst_46 [2] : vector<2x8x8xf32> to vector<2x8xf32>
    %124 = vector.shape_cast %123 : vector<2x8xf32> to vector<2x8x1xf32>
    %125 = vector.broadcast %124 : vector<2x8x1xf32> to vector<2x8x8xf32>
    %126 = arith.subf %122, %125 : vector<2x8x8xf32>
    %127 = math.exp %126 : vector<2x8x8xf32>
    %cst_47 = arith.constant dense<0.000000e+00> : vector<2x8xf32>
    %128 = vector.multi_reduction <add>, %127, %cst_47 [2] : vector<2x8x8xf32> to vector<2x8xf32>
    %129 = vector.shape_cast %128 : vector<2x8xf32> to vector<2x8x1xf32>
    %130 = tpu.reciprocal %129 : vector<2x8x1xf32> -> vector<2x8x1xf32>
    %131 = vector.broadcast %130 : vector<2x8x1xf32> to vector<2x8x8xf32>
    %132 = arith.mulf %127, %131 : vector<2x8x8xf32>
    "tpu.trace_start"() <{level = 10 : i32, message = "btn,bnd->btd"}> : () -> ()
    %cst_48 = arith.constant dense<0.000000e+00> : vector<2x8x8xf32>
    %133 = tpu.matmul %132, %119, %cst_48 {dimension_numbers = #tpu.dot_dimension_numbers<[2], [1], [1], [2], [0, 0, 0, 1, 1, 2], [0], [0]>} : vector<2x8x8xf32>, vector<2x8x8xf32>, vector<2x8x8xf32> -> vector<2x8x8xf32>
    "tpu.trace_stop"() : () -> ()
    %c0_49 = arith.constant 0 : index
    %c0_50 = arith.constant 0 : index
    %c24 = arith.constant 24 : index
    %134 = vector.load %arg8[%c0_49, %c0_50, %c24] : memref<2x8x32xf32, #tpu.memory_space<vmem>>, vector<2x8x8xf32>
    tpu.vector_store %arg8[%c0_49, %c0_50, %c24], %133 {strides = array<i32>} : memref<2x8x32xf32, #tpu.memory_space<vmem>>, vector<2x8x8xf32>,
    %135 = vector.shape_cast %0 : vector<16x32xf32> to vector<2x8x32xf32>
    %c0_51 = arith.constant 0 : index
    %c0_52 = arith.constant 0 : index
    %c0_53 = arith.constant 0 : index
    %136 = vector.load %arg8[%c0_51, %c0_52, %c0_53] : memref<2x8x32xf32, #tpu.memory_space<vmem>>, vector<2x8x32xf32>
    %137 = arith.addf %135, %136 : vector<2x8x32xf32>
    %cst_54 = arith.constant dense<0.000000e+00> : vector<2x8xf32>
    %138 = vector.multi_reduction <add>, %137, %cst_54 [2] : vector<2x8x32xf32> to vector<2x8xf32>
    %139 = vector.shape_cast %138 : vector<2x8xf32> to vector<2x8x1xf32>
    %cst_55 = arith.constant 3.200000e+01 : f32
    %140 = vector.broadcast %cst_55 : f32 to vector<2x8x1xf32>
    %141 = arith.divf %139, %140 : vector<2x8x1xf32>
    %142 = vector.broadcast %141 : vector<2x8x1xf32> to vector<2x8x32xf32>
    %143 = arith.subf %137, %142 : vector<2x8x32xf32>
    %144 = arith.mulf %143, %143 : vector<2x8x32xf32>
    %cst_56 = arith.constant dense<0.000000e+00> : vector<2x8xf32>
    %145 = vector.multi_reduction <add>, %144, %cst_56 [2] : vector<2x8x32xf32> to vector<2x8xf32>
    %146 = vector.shape_cast %145 : vector<2x8xf32> to vector<2x8x1xf32>
    %cst_57 = arith.constant 3.200000e+01 : f32
    %147 = vector.broadcast %cst_57 : f32 to vector<2x8x1xf32>
    %148 = arith.divf %146, %147 : vector<2x8x1xf32>
    %149 = vector.broadcast %141 : vector<2x8x1xf32> to vector<2x8x32xf32>
    %150 = arith.subf %137, %149 : vector<2x8x32xf32>
    %cst_58 = arith.constant 9.99999974E-6 : f32
    %151 = vector.broadcast %cst_58 : f32 to vector<2x8x1xf32>
    %152 = arith.addf %148, %151 : vector<2x8x1xf32>
    %153 = math.rsqrt %152 : vector<2x8x1xf32>
    %154 = vector.broadcast %153 : vector<2x8x1xf32> to vector<2x8x32xf32>
    %155 = arith.mulf %150, %154 : vector<2x8x32xf32>
    %156 = vector.shape_cast %6 : vector<1x32xf32> to vector<1x1x32xf32>
    %157 = vector.broadcast %156 : vector<1x1x32xf32> to vector<2x8x32xf32>
    %158 = arith.mulf %155, %157 : vector<2x8x32xf32>
    %159 = vector.shape_cast %7 : vector<1x32xf32> to vector<1x1x32xf32>
    %160 = vector.broadcast %159 : vector<1x1x32xf32> to vector<2x8x32xf32>
    %161 = arith.addf %158, %160 : vector<2x8x32xf32>
    %c0_59 = arith.constant 0 : index
    %c0_60 = arith.constant 0 : index
    %c0_61 = arith.constant 0 : index
    %162 = vector.load %arg7[%c0_59, %c0_60, %c0_61] : memref<2x8x32xf32, #tpu.memory_space<vmem>>, vector<2x8x32xf32>
    tpu.vector_store %arg7[%c0_59, %c0_60, %c0_61], %161 {strides = array<i32>} : memref<2x8x32xf32, #tpu.memory_space<vmem>>, vector<2x8x32xf32>,
    return
  }
  func.func @transform_0(%arg0: i32) -> (i32, i32) {
    %c0_i32 = arith.constant 0 : i32
    %c0_i32_0 = arith.constant 0 : i32
    %c0_i32_1 = arith.constant 0 : i32
    return %c0_i32, %c0_i32_0 : i32, i32
  }
  func.func @transform_1(%arg0: i32) -> (i32, i32) {
    %c0_i32 = arith.constant 0 : i32
    %c0_i32_0 = arith.constant 0 : i32
    %c0_i32_1 = arith.constant 0 : i32
    return %c0_i32, %c0_i32_0 : i32, i32
  }
  func.func @transform_2(%arg0: i32) -> (i32, i32) {
    %c0_i32 = arith.constant 0 : i32
    %c0_i32_0 = arith.constant 0 : i32
    %c0_i32_1 = arith.constant 0 : i32
    return %c0_i32, %c0_i32_0 : i32, i32
  }
  func.func @transform_3(%arg0: i32) -> (i32, i32) {
    %c0_i32 = arith.constant 0 : i32
    %c0_i32_0 = arith.constant 0 : i32
    %c0_i32_1 = arith.constant 0 : i32
    return %c0_i32, %c0_i32_0 : i32, i32
  }
  func.func @transform_4(%arg0: i32) -> (i32, i32) {
    %c0_i32 = arith.constant 0 : i32
    %c0_i32_0 = arith.constant 0 : i32
    %c0_i32_1 = arith.constant 0 : i32
    return %c0_i32, %c0_i32_0 : i32, i32
  }
  func.func @transform_5(%arg0: i32) -> (i32, i32) {
    %c0_i32 = arith.constant 0 : i32
    %c0_i32_0 = arith.constant 0 : i32
    %c0_i32_1 = arith.constant 0 : i32
    return %c0_i32, %c0_i32_0 : i32, i32
  }
  func.func @transform_6(%arg0: i32) -> (i32, i32, i32) {
    %c0_i32 = arith.constant 0 : i32
    %c0_i32_0 = arith.constant 0 : i32
    %c0_i32_1 = arith.constant 0 : i32
    %c0_i32_2 = arith.constant 0 : i32
    return %c0_i32, %c0_i32_0, %c0_i32_1 : i32, i32, i32
  }
}

</mosaic_0001>

<bundles_post_ra>
// kernel: tpu_custom_call.1
= control target key start
LH: loop header
LB: loop body
LE: loop exit
PB: predicated region body
PF: predicated region fallthrough
CT: control target
= control target key end

     0   :  { %11 = vsyncpa [#allocation4], 0  ;;  %s2381_s0 = inlined_call_operand.hbm [shape: f32[16,32], index: 0, kind: input, shape index: {}]   ;;  %s2382_s1 = inlined_call_operand.hbm [shape: f32[16,32], index: 1, kind: input, shape index: {}]   ;;  %s2383_s2 = inlined_call_operand.hbm [shape: f32[32,32], index: 2, kind: input, shape index: {}]   ;;  %s2384_s3 = inlined_call_operand.hbm [shape: f32[32,64], index: 3, kind: input, shape index: {}]   ;;  %s2385_s4 = inlined_call_operand.vmem [shape: f32[4,32], index: 4, kind: input, shape index: {}]   ;;  %s2386_s5 = inlined_call_operand.vmem [shape: f32[2,32], index: 5, kind: input, shape index: {}]   ;;  %s2387_s6 = inlined_call_operand.hbm [shape: f32[2,8,32], index: 6, kind: output, shape index: {}]  }
   0x1   :  { %12 = vsyncpa [#allocation7], 0 }
   0x2   :  { %13 = vsyncpa [#allocation10], 0 }
   0x3   :  { %14 = vsyncpa [#allocation5], 0  ;;  %s2100_s21 = smov [#allocation6]   ;;  %s2101_s23 = smov [#allocation3]  }
   0x4   :  { %s32_s22 = sshll.u32 %s2100_s21, 4  ;;  %s20_s24 = sshll.u32 %s2101_s23, 4  ;;  %s33_s22 = int_to_ptr.vmem [resolvable:$true] %s32_s22  ;;  %s21_s24 = int_to_ptr.vmem [resolvable:$true] %s20_s24 }
   0x5   :  { %s2000_s25 = scalar_lea.vmem %s33_s22, 256  ;;  %p2005_p1 = scmp.lt.s32.totalorder %s33_s22, %s33_s22 }
   0x6   :  { %p2001_p0 = scmp.ne.s32.totalorder %s33_s22, %s2000_s25  ;;  %p2006_p2 = scmp.lt.s32.totalorder %s2000_s25, %s2000_s25 }
   0x8   :  { %p2007_p3 = por %p2006_p2, %p2005_p1 }
   0xa   :  { %p2008_p4 = pnand %p2007_p3, %p2001_p0 }
   0xc   :  { %2011 = shalt.err (!%p2008_p4)
}
   0xd   :  { %s2102_s26 = smov 128   ;;  %s2103_s27 = smov 8  }
   0xe   :  { %38 = dma.hbm_to_vmem [thread:$0]  %s2382_s1, 256, %s33_s22, [#allocation7], %s2102_s26, %s2102_s26, %s2103_s27  }
   0xf   :  { %s2020_s30 = scalar_lea.vmem %s21_s24, 256  ;;  %p2025_p6 = scmp.lt.s32.totalorder %s21_s24, %s21_s24 }
  0x10   :  { %p2021_p5 = scmp.ne.s32.totalorder %s21_s24, %s2020_s30  ;;  %p2026_p7 = scmp.lt.s32.totalorder %s2020_s30, %s2020_s30 }
  0x12   :  { %p2027_p8 = por %p2026_p7, %p2025_p6 }
  0x14   :  { %p2028_p9 = pnand %p2027_p8, %p2021_p5 }
  0x16   :  { %2031 = shalt.err (!%p2028_p9)
}
  0x17   :  { %26 = dma.hbm_to_vmem [thread:$0]  %s2381_s0, 256, %s21_s24, [#allocation4], %s2102_s26, %s2102_s26, %s2103_s27  }
  0x18   :  { %s2104_s9 = smov [#allocation8]   ;;  %s2105_s11 = smov [#allocation9]  }
  0x19   :  { %s44_s10 = sshll.u32 %s2104_s9, 4  ;;  %s56_s12 = sshll.u32 %s2105_s11, 4  ;;  %s45_s10 = int_to_ptr.vmem [resolvable:$true] %s44_s10  ;;  %s57_s12 = int_to_ptr.vmem [resolvable:$true] %s56_s12 }
  0x1a   :  { %s2040_s1 = scalar_lea.vmem %s45_s10, 512  ;;  %p2045_p11 = scmp.lt.s32.totalorder %s45_s10, %s45_s10 }
  0x1b   :  { %p2041_p10 = scmp.ne.s32.totalorder %s45_s10, %s2040_s1  ;;  %p2046_p12 = scmp.lt.s32.totalorder %s2040_s1, %s2040_s1 }
  0x1d   :  { %p2047_p13 = por %p2046_p12, %p2045_p11 }
  0x1f   :  { %p2048_p0 = pnand %p2047_p13, %p2041_p10 }
  0x21   :  { %2051 = shalt.err (!%p2048_p0)
}
  0x22   :  { %50 = dma.hbm_to_vmem [thread:$0]  %s2383_s2, 512, %s45_s10, [#allocation7], %s2102_s26, %s2102_s26, %s2103_s27  }
  0x23   :  { %s2060_s0 = scalar_lea.vmem %s57_s12, 512  ;;  %p2065_p2 = scmp.lt.s32.totalorder %s57_s12, %s57_s12 }
  0x24   :  { %p2061_p1 = scmp.ne.s32.totalorder %s57_s12, %s2060_s0  ;;  %p2066_p3 = scmp.lt.s32.totalorder %s2060_s0, %s2060_s0 }
  0x26   :  { %p2067_p4 = por %p2066_p3, %p2065_p2 }
  0x28   :  { %p2068_p5 = pnand %p2067_p4, %p2061_p1 }
  0x2a   :  { %2071 = shalt.err (!%p2068_p5)
}
  0x2b   :  { %62 = dma.hbm_to_vmem [thread:$0]  %s2384_s3, 512, %s57_s12, [#allocation10], %s2102_s26, %s2102_s26, %s2103_s27  }
  0x2c   :  { %2092 = dma.done.wait [#allocation4], 256  }
  0x2d   :  { %2093 = vsyncadd [#allocation4], 4294967040 }
  0x2e   :  { %2094 = dma.done.wait [#allocation7], 768  }
  0x2f   :  { %2095 = vsyncadd [#allocation7], 4294966528 }
  0x30   :  { %2096 = dma.done.wait [#allocation10], 512  }
  0x31   :  { %2097 = vsyncadd [#allocation10], 4294966784  ;;  %vm85_vm0 = vcmask 261120   ;;  %v81_v0 = vld [vmem:[#allocation6] sm:$0xff]  ;;  %v82_v1 = vld [vmem:[#allocation6 + $0x8] sm:$0xff]  ;;  %v113_v43 = vlaneseq  ;;  %vm2107_vm1 = vmmov 0  }
  0x32   :  { %v2177_v2 = vld [vmem:[#allocation3] sm:$0xff]  ;;  %v125_v3 = vsel %vm85_vm0, %v81_v0, 0.0  ;;  %v2182_v5 = vld [vmem:[#allocation3 + $0x8] sm:$0xff]  ;;  %v128_v6 = vsel %vm85_vm0, %v82_v1, 0.0  ;;  %v251_v28 = vld [vmem:[#allocation9 + $0x18] sm:$0xff]  ;;  %vm333_vm2 = vcmask 64512  }
  0x33   :  { %v86_v4 = vsel %vm85_vm0, %v2177_v2, 0.0  ;;  %126 = vadd.xlane.f32.xlu0 %v125_v3  ;;  %v89_v7 = vsel %vm85_vm0, %v2182_v5, 0.0  ;;  %v250_v29 = vld [vmem:[#allocation9 + $0x10] sm:$0xff]  ;;  %v166_v30 = vld [vmem:[#allocation8 + $0x18] sm:$0xff]  ;;  %1839 = vmatprep.subr.mxu1 %v251_v28  ;;  %v249_v31 = vld [vmem:[#allocation9 + $0x8] sm:$0xff]  ;;  %v2209_v48 = vshrl.u32 %v113_v43, 7 }
  0x34   :  { %87 = vadd.xlane.f32.xlu1 %v86_v4  ;;  %1828 = vmatprep.subr.mxu0 %v166_v30  ;;  %v165_v32 = vld [vmem:[#allocation8 + $0x10] sm:$0xff]  ;;  %v248_v33 = vld [vmem:[#allocation9] sm:$0xff]  ;;  %v164_v34 = vld [vmem:[#allocation8 + $0x8] sm:$0xff]  ;;  %s2110_s19 = smov 88   ;;  %s2111_s20 = smov 112   ;;  %vm1004_vm3 = vcmask 130112  }
  0x35   :  { %1840 = vmatpush3.msra.mxu1 %v251_v28  ;;  %1829 = vmatpush3.msra.mxu0 %v166_v30  ;;  %v163_v35 = vld [vmem:[#allocation8] sm:$0xff]  ;;  %v115_v50 = vsub.s32 0, %v2209_v48  ;;  %v84_v51 = vld [vmem:[%s2386_s5] sm:$0x3]  ;;  %v121_v52 = vsub.s32 1, %v2209_v48  ;;  %s2109_s5 = smov 120  }
  0x36   :  { %1841 = vmatprep.subr.mxu1 %v250_v29  ;;  %1830 = vmatprep.subr.mxu0 %v165_v32  ;;  %v2219_v55 = vld [vmem:[%s2385_s4] sm:$0xf]  ;;  %s2108_s4 = smov 96   ;;  %s2112_s21 = smov 80   ;;  %vm1347_vm4 = vcmask 195712   ;;  %vm1690_vm5 = vcmask 261312  }
  0x37   :  { %129 = vadd.xlane.f32.xlu0 %v128_v6  ;;  %1842 = vmatpush3.msra.mxu1 %v250_v29  ;;  %v154_v53 = vrot.slane %v84_v51, %v115_v50  ;;  %v160_v57 = vrot.slane %v84_v51, %v121_v52  ;;  %v116_v59 = vrot.slane %v2219_v55, %v115_v50  ;;  %s2113_s22 = smov 104   ;;  %s2114_s23 = smov 72  }
  0x38   :  { %90 = vadd.xlane.f32.xlu1 %v89_v7  ;;  %1843 = vmatprep.subr.mxu1 %v249_v31  ;;  %s2115_s24 = smov 16   ;;  %s2116_s25 = smov 24  }
  0x39   :  { %1844 = vmatpush3.msra.mxu1 %v249_v31  ;;  %1831 = vmatpush3.msra.mxu0 %v165_v32  ;;  %s2117_s28 = smov [#allocation11]  }
  0x3a   :  { %1845 = vmatprep.subr.mxu1 %v248_v33  ;;  %1832 = vmatprep.subr.mxu0 %v164_v34  ;;  %s1742_s29 = sshll.u32 %s2117_s28, 4  ;;  %s1743_s29 = int_to_ptr.vmem [resolvable:$true] %s1742_s29 }
  0x3b   :  { %1846 = vmatpush3.msra.mxu1 %v248_v33  ;;  %1833 = vmatpush3.msra.mxu0 %v164_v34  ;;  %s2072_s30 = scalar_lea.vmem %s1743_s29, 256  ;;  %p2077_p7 = scmp.lt.s32.totalorder %s1743_s29, %s1743_s29 }
  0x3c   :  { %1834 = vmatprep.subr.mxu0 %v163_v35  ;;  %p2073_p6 = scmp.ne.s32.totalorder %s1743_s29, %s2072_s30  ;;  %p2078_p8 = scmp.lt.s32.totalorder %s2072_s30, %s2072_s30 }
  0x3d   :  { %1835 = vmatpush3.msra.mxu0 %v163_v35 }
  0x3e   :  { %p2079_p9 = por %p2078_p8, %p2077_p7 }
  0x40   :  { %p2080_p10 = pnand %p2079_p9, %p2073_p6 }
  0xbc   :  { %v127_v8 = vpop.xlane.xlu0 %126 }
  0xbd   :  { %v88_v9 = vpop.xlane.xlu1 %87  ;;  %v131_v10 = vmul.f32 0.03125, %v127_v8 }
  0xbe   :  { %v93_v11 = vmul.f32 0.03125, %v88_v9 }
  0xbf   :  { %v2187_v12 = vsub.f32 %v81_v0, %v131_v10  ;;  %v122_v0 = vrot.slane %v2219_v55, %v121_v52 }
  0xc0   :  { %v2190_v13 = vsub.f32 %v2177_v2, %v93_v11  ;;  %v130_v14 = vpop.xlane.xlu0 %129 }
  0xc1   :  { %v91_v15 = vpop.xlane.xlu1 %90  ;;  %v132_v16 = vmul.f32 0.03125, %v130_v14  ;;  %v135_v17 = vmul.f32 %v2187_v12, %v2187_v12 }
  0xc2   :  { %v94_v18 = vmul.f32 0.03125, %v91_v15  ;;  %v97_v19 = vmul.f32 %v2190_v13, %v2190_v13 }
  0xc3   :  { %v2196_v20 = vsub.f32 %v82_v1, %v132_v16  ;;  %v137_v21 = vsel %vm85_vm0, %v135_v17, 0.0 }
  0xc4   :  { %v2200_v22 = vsub.f32 %v2182_v5, %v94_v18  ;;  %138 = vadd.xlane.f32.xlu0 %v137_v21  ;;  %v99_v24 = vsel %vm85_vm0, %v97_v19, 0.0 }
  0xc5   :  { %v136_v23 = vmul.f32 %v2196_v20, %v2196_v20 }
  0xc6   :  { %v98_v25 = vmul.f32 %v2200_v22, %v2200_v22 }
  0xc7   :  { %v140_v26 = vsel %vm85_vm0, %v136_v23, 0.0 }
  0xc8   :  { %141 = vadd.xlane.f32.xlu1 %v140_v26  ;;  %100 = vadd.xlane.f32.xlu0 %v99_v24  ;;  %v102_v27 = vsel %vm85_vm0, %v98_v25, 0.0 }
  0xcc   :  { %103 = vadd.xlane.f32.xlu1 %v102_v27 }
 0x14d   :  { %v139_v36 = vpop.xlane.xlu0 %138 }
 0x14e   :  { %v143_v37 = vmul.f32 0.03125, %v139_v36 }
 0x150   :  { %v145_v38 = vadd.f32 1e-05, %v143_v37 }
 0x151   :  { %v101_v39 = vpop.xlane.xlu0 %100  ;;  %v142_v40 = vpop.xlane.xlu1 %141 }
 0x152   :  { %1948 = vrsqrt.f32 %v145_v38  ;;  %v105_v41 = vmul.f32 0.03125, %v101_v39  ;;  %v144_v42 = vmul.f32 0.03125, %v142_v40 }
 0x154   :  { %v107_v44 = vadd.f32 1e-05, %v105_v41  ;;  %v146_v45 = vadd.f32 1e-05, %v144_v42 }
 0x155   :  { %v104_v46 = vpop.xlane.xlu1 %103 }
 0x156   :  { %1950 = vrsqrt.f32 %v107_v44  ;;  %v106_v47 = vmul.f32 0.03125, %v104_v46 }
 0x157   :  { %1952 = vrsqrt.f32 %v146_v45 }
 0x158   :  { %v108_v49 = vadd.f32 1e-05, %v106_v47 }
 0x15a   :  { %1954 = vrsqrt.f32 %v108_v49 }
 0x15f   :  { %v1949_v54 = vpop.eup %1948 }
 0x160   :  { %v149_v56 = vmul.f32 %v1949_v54, %v2187_v12  ;;  %v2106_v12 = vmov 0.0  }
 0x161   :  { %1855 = vmatprep.subr.mxu1 %v2106_v12  ;;  %1850 = vmatprep.subr.mxu0 %v2106_v12 }
 0x162   :  { %v155_v58 = vmul.f32 %v154_v53, %v149_v56 }
 0x163   :  { %v1951_v60 = vpop.eup %1950 }
 0x164   :  { %v1953_v61 = vpop.eup %1952  ;;  %v161_v62 = vadd.f32 %v160_v57, %v155_v58  ;;  %v111_v63 = vmul.f32 %v1951_v60, %v2190_v13 }
 0x165   :  { %v150_v1 = vmul.f32 %v1953_v61, %v2196_v20 }
 0x166   :  { %1847 = vmatprep.mubr.msk.f32.mxu1 %vm85_vm0, %v161_v62  ;;  %v117_v3 = vmul.f32 %v116_v59, %v111_v63 }
 0x167   :  { %v1955_v4 = vpop.eup %1954  ;;  %v156_v6 = vmul.f32 %v154_v53, %v150_v1 }
 0x168   :  { %v112_v7 = vmul.f32 %v1955_v4, %v2200_v22  ;;  %v123_v8 = vadd.f32 %v122_v0, %v117_v3 }
 0x169   :  { %v162_v9 = vadd.f32 %v160_v57, %v156_v6 }
 0x16a   :  { %v118_v10 = vmul.f32 %v116_v59, %v112_v7  ;;  %1836 = vmatprep.mubr.msk.f32.mxu0 %vm85_vm0, %v123_v8 }
 0x16b   :  { %1848 = vmatmul.mubr.msk.f32.vlgmr.msra.gmra.mxu1 %vm85_vm0, %v162_v9 }
 0x16c   :  { %v124_v11 = vadd.f32 %v122_v0, %v118_v10  ;;  %1857 = vmatprep.mubr.msk.f32.mxu1 %vm2107_vm1, %v2106_v12 }
 0x16e   :  { %1837 = vmatmul.mubr.msk.f32.vlgmr.msra.gmra.mxu0 %vm85_vm0, %v124_v11 }
 0x16f   :  { %1852 = vmatprep.mubr.msk.f32.mxu0 %vm2107_vm1, %v2106_v12 }
 0x22b   :  { %v2237_v13 = vpop.f32.mrf.mxu1 }
 0x22c   :  { %1856 = vmatpush3.xpose.msk.msra.mxu1 %vm333_vm2, %v2237_v13 }
 0x22d   :  { %v2241_v14 = vpop.f32.mrf.mxu1  ;;  %1865 = vmatprep.subr.mxu1 %v2106_v12 }
 0x22e   :  { %1851 = vmatpush3.xpose.msk.msra.mxu0 %vm333_vm2, %v2241_v14  ;;  %v2246_v15 = vpop.f32.mrf.mxu0 }
 0x22f   :  { %1858 = vmatmul.mubr.msk.f32.vlgmr.msra.gmra.mxu1 %vm333_vm2, %v2246_v15  ;;  %1860 = vmatprep.subr.mxu0 %v2106_v12 }
 0x230   :  { %v2251_v16 = vpop.f32.mrf.mxu0  ;;  %1867 = vmatprep.mubr.msk.f32.mxu1 %vm2107_vm1, %v2106_v12 }
 0x231   :  { %1853 = vmatmul.mubr.msk.f32.vlgmr.msra.gmra.mxu0 %vm333_vm2, %v2251_v16 }
 0x232   :  { %1862 = vmatprep.mubr.msk.f32.mxu0 %vm2107_vm1, %v2106_v12 }
 0x2ef   :  { %v482_v17 = vpop.f32.mrf.mxu1 }
 0x2f0   :  { %v487_v18 = vmul.f32 0.35355338, %v482_v17 }
 0x2f1   :  { %v406_v19 = vpop.f32.mrf.mxu0  ;;  %v1859_v20 = vpop.f32.mrf.mxu1 }
 0x2f2   :  { %v486_v21 = vmul.f32 0.35355338, %v406_v19  ;;  %v491_v22 = vsel %vm333_vm2, %v487_v18, -inf }
 0x2f3   :  { %492 = vmax.xlane.f32.xlu1 %v491_v22  ;;  %v1854_v23 = vpop.f32.mrf.mxu0 }
 0x2f4   :  { %v488_v24 = vsel %vm333_vm2, %v486_v21, -inf }
 0x2f5   :  { %489 = vmax.xlane.f32.xlu0 %v488_v24 }
 0x37c   :  { %v493_v25 = vpop.xlane.xlu1 %492 }
 0x37d   :  { %v495_v26 = vsub.f32 %v487_v18, %v493_v25 }
 0x37e   :  { %v490_v27 = vpop.xlane.xlu0 %489 }
 0x37f   :  { %v498_v28 = vmul.f32 1.442695, %v495_v26  ;;  %v494_v29 = vsub.f32 %v486_v21, %v490_v27 }
 0x381   :  { %1956 = vpow2.f32 %v498_v28  ;;  %v496_v30 = vmul.f32 1.442695, %v494_v29 }
 0x383   :  { %1958 = vpow2.f32 %v496_v30 }
 0x38e   :  { %v1957_v31 = vpop.eup %1956 }
 0x38f   :  { %v503_v32 = vsel %vm333_vm2, %v1957_v31, 0.0 }
 0x390   :  { %v1959_v33 = vpop.eup %1958  ;;  %504 = vadd.xlane.f32.xlu1 %v503_v32 }
 0x391   :  { %v500_v34 = vsel %vm333_vm2, %v1959_v33, 0.0 }
 0x392   :  { %501 = vadd.xlane.f32.xlu0 %v500_v34 }
 0x3a1   :  { %586 = vrot.lane.b32.xlu1 %v2237_v13, %s2108_s4 }
 0x3a5   :  { %666 = vrot.lane.b32.xlu1 %v2241_v14, %s2109_s5 }
 0x3a8   :  { %510 = vrot.lane.b32.xlu0 %v2241_v14, %s2108_s4 }
 0x3a9   :  { %744 = vrot.lane.b32.xlu1 %v2237_v13, %s2109_s5 }
 0x3ac   :  { %664 = vrot.lane.b32.xlu0 %v2251_v16, %s2109_s5 }
 0x3ad   :  { %742 = vrot.lane.b32.xlu1 %v2246_v15, %s2109_s5 }
 0x419   :  { %v505_v35 = vpop.xlane.xlu1 %504 }
 0x41a   :  { %1960 = vrcp.f32 %v505_v35 }
 0x41b   :  { %v502_v36 = vpop.xlane.xlu0 %501 }
 0x41c   :  { %1962 = vrcp.f32 %v502_v36 }
 0x41d   :  { %v587_v37 = vpop.permute.xlu1 %586 }
 0x41e   :  { %1866 = vmatpush3.msra.mxu1 %v587_v37 }
 0x41f   :  { %v511_v38 = vpop.permute.xlu0 %510  ;;  %1875 = vmatprep.subr.mxu1 %v2106_v12 }
 0x420   :  { %1861 = vmatpush3.msra.mxu0 %v511_v38 }
 0x421   :  { %v667_v39 = vpop.permute.xlu1 %666  ;;  %1870 = vmatprep.subr.mxu0 %v2106_v12 }
 0x423   :  { %v665_v46 = vpop.permute.xlu0 %664 }
 0x425   :  { %v745_v41 = vpop.permute.xlu1 %744 }
 0x427   :  { %v1961_v40 = vpop.eup %1960 }
 0x428   :  { %v509_v42 = vmul.f32 %v1961_v40, %v1957_v31 }
 0x429   :  { %v1963_v43 = vpop.eup %1962  ;;  %v743_v45 = vpop.permute.xlu1 %742 }
 0x42a   :  { %1868 = vmatmul.mubr.msk.f32.vlgmr.msra.gmra.mxu1 %vm333_vm2, %v509_v42  ;;  %v508_v44 = vmul.f32 %v1963_v43, %v1959_v33 }
 0x42b   :  { %1876 = vmatpush3.xpose.msk.msra.mxu1 %vm333_vm2, %v745_v41  ;;  %1877 = vmatprep.mubr.msk.f32.mxu1 %vm2107_vm1, %v2106_v12 }
 0x42c   :  { %1863 = vmatmul.mubr.msk.f32.vlgmr.msra.gmra.mxu0 %vm333_vm2, %v508_v44  ;;  %1885 = vmatprep.subr.mxu1 %v2106_v12 }
 0x42d   :  { %1871 = vmatpush3.xpose.msk.msra.mxu0 %vm333_vm2, %v667_v39  ;;  %1872 = vmatprep.mubr.msk.f32.mxu0 %vm2107_vm1, %v2106_v12 }
 0x42e   :  { %1878 = vmatmul.mubr.msk.f32.vlgmr.msra.gmra.mxu1 %vm333_vm2, %v743_v45  ;;  %1880 = vmatprep.subr.mxu0 %v2106_v12 }
 0x42f   :  { %1887 = vmatprep.mubr.msk.f32.mxu1 %vm2107_vm1, %v2106_v12 }
 0x430   :  { %1873 = vmatmul.mubr.msk.f32.vlgmr.msra.gmra.mxu0 %vm333_vm2, %v665_v46 }
 0x431   :  { %1882 = vmatprep.mubr.msk.f32.mxu0 %vm2107_vm1, %v2106_v12 }
 0x4ea   :  { %v658_v47 = vpop.f32.mrf.mxu1 }
 0x4eb   :  { %663 = vst.msk [vmem:[#allocation2 + $0x8] sm:$0xff] %vm333_vm2, %v658_v47 }
 0x4ec   :  { %v582_v49 = vpop.f32.mrf.mxu0  ;;  %v1869_v50 = vpop.f32.mrf.mxu1 }
 0x4ed   :  { %662 = vst.msk [vmem:[#allocation2] sm:$0xff] %vm333_vm2, %v582_v49 }
 0x4ee   :  { %v1864_v51 = vpop.f32.mrf.mxu0  ;;  %v816_v52 = vpop.f32.mrf.mxu1 }
 0x4ef   :  { %v821_v53 = vmul.f32 0.35355338, %v816_v52 }
 0x4f0   :  { %v738_v54 = vpop.f32.mrf.mxu0  ;;  %v1879_v56 = vpop.f32.mrf.mxu1 }
 0x4f1   :  { %v820_v57 = vmul.f32 0.35355338, %v738_v54  ;;  %v825_v58 = vsel %vm333_vm2, %v821_v53, -inf }
 0x4f2   :  { %826 = vmax.xlane.f32.xlu1 %v825_v58  ;;  %v1874_v59 = vpop.f32.mrf.mxu0 }
 0x4f3   :  { %v822_v60 = vsel %vm333_vm2, %v820_v57, -inf }
 0x4f4   :  { %823 = vmax.xlane.f32.xlu0 %v822_v60 }
 0x503   :  { %920 = vrot.lane.b32.xlu1 %v2237_v13, %s2110_s19 }
 0x507   :  { %1009 = vrot.lane.b32.xlu1 %v2241_v14, %s2111_s20 }
 0x50b   :  { %1087 = vrot.lane.b32.xlu1 %v2237_v13, %s2111_s20 }
 0x50f   :  { %1085 = vrot.lane.b32.xlu1 %v2246_v15, %s2111_s20 }
 0x57b   :  { %v827_v61 = vpop.xlane.xlu1 %826 }
 0x57c   :  { %v829_v62 = vsub.f32 %v821_v53, %v827_v61 }
 0x57d   :  { %v824_v63 = vpop.xlane.xlu0 %823 }
 0x57e   :  { %v832_v0 = vmul.f32 1.442695, %v829_v62  ;;  %v828_v1 = vsub.f32 %v820_v57, %v824_v63 }
 0x57f   :  { %v921_v3 = vpop.permute.xlu1 %920 }
 0x580   :  { %1964 = vpow2.f32 %v832_v0  ;;  %v830_v4 = vmul.f32 1.442695, %v828_v1  ;;  %1886 = vmatpush3.msra.mxu1 %v921_v3 }
 0x581   :  { %1895 = vmatprep.subr.mxu1 %v2106_v12 }
 0x582   :  { %1966 = vpow2.f32 %v830_v4 }
 0x583   :  { %v1010_v17 = vpop.permute.xlu1 %1009 }
 0x587   :  { %v1088_v20 = vpop.permute.xlu1 %1087 }
 0x58b   :  { %v1086_v24 = vpop.permute.xlu1 %1085 }
 0x58d   :  { %v1965_v6 = vpop.eup %1964 }
 0x58e   :  { %v837_v7 = vsel %vm333_vm2, %v1965_v6, 0.0 }
 0x58f   :  { %v1967_v8 = vpop.eup %1966  ;;  %838 = vadd.xlane.f32.xlu0 %v837_v7 }
 0x590   :  { %v834_v9 = vsel %vm333_vm2, %v1967_v8, 0.0 }
 0x593   :  { %835 = vadd.xlane.f32.xlu0 %v834_v9 }
 0x5a9   :  { %844 = vrot.lane.b32.xlu0 %v2241_v14, %s2110_s19 }
 0x5ad   :  { %1007 = vrot.lane.b32.xlu0 %v2251_v16, %s2111_s20 }
 0x618   :  { %v839_v10 = vpop.xlane.xlu0 %838 }
 0x619   :  { %1968 = vrcp.f32 %v839_v10 }
 0x61c   :  { %v836_v11 = vpop.xlane.xlu0 %835 }
 0x61d   :  { %1970 = vrcp.f32 %v836_v11 }
 0x620   :  { %v845_v18 = vpop.permute.xlu0 %844 }
 0x621   :  { %1881 = vmatpush3.msra.mxu0 %v845_v18 }
 0x622   :  { %1890 = vmatprep.subr.mxu0 %v2106_v12 }
 0x624   :  { %v1008_v25 = vpop.permute.xlu0 %1007 }
 0x626   :  { %v1969_v19 = vpop.eup %1968 }
 0x627   :  { %v843_v21 = vmul.f32 %v1969_v19, %v1965_v6 }
 0x629   :  { %1888 = vmatmul.mubr.msk.f32.vlgmr.msra.gmra.mxu1 %vm333_vm2, %v843_v21 }
 0x62a   :  { %v1971_v22 = vpop.eup %1970  ;;  %1896 = vmatpush3.xpose.msk.msra.mxu1 %vm333_vm2, %v1088_v20  ;;  %1897 = vmatprep.mubr.msk.f32.mxu1 %vm2107_vm1, %v2106_v12 }
 0x62b   :  { %v842_v23 = vmul.f32 %v1971_v22, %v1967_v8  ;;  %1905 = vmatprep.subr.mxu1 %v2106_v12 }
 0x62d   :  { %1883 = vmatmul.mubr.msk.f32.vlgmr.msra.gmra.mxu0 %vm333_vm2, %v842_v23  ;;  %1898 = vmatmul.mubr.msk.f32.vlgmr.msra.gmra.mxu1 %vm333_vm2, %v1086_v24 }
 0x62e   :  { %1891 = vmatpush3.xpose.msk.msra.mxu0 %vm333_vm2, %v1010_v17  ;;  %1892 = vmatprep.mubr.msk.f32.mxu0 %vm2107_vm1, %v2106_v12 }
 0x62f   :  { %1900 = vmatprep.subr.mxu0 %v2106_v12  ;;  %1907 = vmatprep.mubr.msk.f32.mxu1 %vm2107_vm1, %v2106_v12 }
 0x631   :  { %1893 = vmatmul.mubr.msk.f32.vlgmr.msra.gmra.mxu0 %vm333_vm2, %v1008_v25 }
 0x632   :  { %1902 = vmatprep.mubr.msk.f32.mxu0 %vm2107_vm1, %v2106_v12 }
 0x6e9   :  { %v2317_v26 = vpop.f32.mrf.mxu1 }
 0x6eb   :  { %v1889_v27 = vpop.f32.mrf.mxu1 }
 0x6ed   :  { %v2319_v28 = vpop.f32.mrf.mxu0  ;;  %v1159_v29 = vpop.f32.mrf.mxu1 }
 0x6ee   :  { %v1164_v30 = vmul.f32 0.35355338, %v1159_v29 }
 0x6ef   :  { %v1884_v31 = vpop.f32.mrf.mxu0  ;;  %v1899_v32 = vpop.f32.mrf.mxu1 }
 0x6f0   :  { %v1168_v33 = vsel %vm333_vm2, %v1164_v30, -inf }
 0x6f1   :  { %1169 = vmax.xlane.f32.xlu1 %v1168_v33  ;;  %v1081_v34 = vpop.f32.mrf.mxu0 }
 0x6f2   :  { %v1163_v35 = vmul.f32 0.35355338, %v1081_v34 }
 0x6f3   :  { %v1894_v36 = vpop.f32.mrf.mxu0 }
 0x6f4   :  { %v1165_v37 = vsel %vm333_vm2, %v1163_v35, -inf }
 0x6f5   :  { %1166 = vmax.xlane.f32.xlu0 %v1165_v37 }
 0x702   :  { %1263 = vrot.lane.b32.xlu1 %v2237_v13, %s2112_s21 }
 0x706   :  { %1352 = vrot.lane.b32.xlu1 %v2241_v14, %s2113_s22 }
 0x70a   :  { %1430 = vrot.lane.b32.xlu1 %v2237_v13, %s2113_s22 }
 0x70e   :  { %1428 = vrot.lane.b32.xlu1 %v2246_v15, %s2113_s22 }
 0x77a   :  { %v1170_v38 = vpop.xlane.xlu1 %1169 }
 0x77b   :  { %v1172_v39 = vsub.f32 %v1164_v30, %v1170_v38 }
 0x77d   :  { %v1175_v40 = vmul.f32 1.442695, %v1172_v39 }
 0x77e   :  { %v1264_v41 = vpop.permute.xlu1 %1263  ;;  %v1167_v42 = vpop.xlane.xlu0 %1166 }
 0x77f   :  { %1972 = vpow2.f32 %v1175_v40  ;;  %v1171_v43 = vsub.f32 %v1163_v35, %v1167_v42  ;;  %1906 = vmatpush3.msra.mxu1 %v1264_v41 }
 0x780   :  { %1915 = vmatprep.subr.mxu1 %v2106_v12 }
 0x781   :  { %v1173_v44 = vmul.f32 1.442695, %v1171_v43 }
 0x782   :  { %v1353_v51 = vpop.permute.xlu1 %1352 }
 0x783   :  { %1974 = vpow2.f32 %v1173_v44 }
 0x786   :  { %v1431_v54 = vpop.permute.xlu1 %1430 }
 0x78a   :  { %v1429_v58 = vpop.permute.xlu1 %1428 }
 0x78c   :  { %v1973_v45 = vpop.eup %1972 }
 0x78d   :  { %v1180_v46 = vsel %vm333_vm2, %v1973_v45, 0.0 }
 0x78e   :  { %1181 = vadd.xlane.f32.xlu0 %v1180_v46 }
 0x790   :  { %v1975_v47 = vpop.eup %1974 }
 0x791   :  { %v1177_v49 = vsel %vm333_vm2, %v1975_v47, 0.0 }
 0x792   :  { %1178 = vadd.xlane.f32.xlu0 %v1177_v49 }
 0x7a8   :  { %1187 = vrot.lane.b32.xlu0 %v2241_v14, %s2112_s21 }
 0x7ac   :  { %1350 = vrot.lane.b32.xlu0 %v2251_v16, %s2113_s22 }
 0x817   :  { %v1182_v15 = vpop.xlane.xlu0 %1181 }
 0x818   :  { %1976 = vrcp.f32 %v1182_v15 }
 0x81b   :  { %v1179_v50 = vpop.xlane.xlu0 %1178 }
 0x81c   :  { %1978 = vrcp.f32 %v1179_v50 }
 0x81f   :  { %v1188_v52 = vpop.permute.xlu0 %1187 }
 0x820   :  { %1901 = vmatpush3.msra.mxu0 %v1188_v52 }
 0x821   :  { %1910 = vmatprep.subr.mxu0 %v2106_v12 }
 0x823   :  { %v1351_v59 = vpop.permute.xlu0 %1350 }
 0x825   :  { %v1977_v53 = vpop.eup %1976 }
 0x826   :  { %v1186_v56 = vmul.f32 %v1977_v53, %v1973_v45 }
 0x828   :  { %1908 = vmatmul.mubr.msk.f32.vlgmr.msra.gmra.mxu1 %vm333_vm2, %v1186_v56 }
 0x829   :  { %v1979_v57 = vpop.eup %1978  ;;  %1916 = vmatpush3.xpose.msk.msra.mxu1 %vm333_vm2, %v1431_v54  ;;  %1917 = vmatprep.mubr.msk.f32.mxu1 %vm2107_vm1, %v2106_v12 }
 0x82a   :  { %v1185_v16 = vmul.f32 %v1979_v57, %v1975_v47  ;;  %1925 = vmatprep.subr.mxu1 %v2106_v12 }
 0x82c   :  { %1903 = vmatmul.mubr.msk.f32.vlgmr.msra.gmra.mxu0 %vm333_vm2, %v1185_v16  ;;  %1918 = vmatmul.mubr.msk.f32.vlgmr.msra.gmra.mxu1 %vm333_vm2, %v1429_v58 }
 0x82d   :  { %1911 = vmatpush3.xpose.msk.msra.mxu0 %vm333_vm2, %v1353_v51  ;;  %1912 = vmatprep.mubr.msk.f32.mxu0 %vm2107_vm1, %v2106_v12 }
 0x82e   :  { %1920 = vmatprep.subr.mxu0 %v2106_v12  ;;  %1927 = vmatprep.mubr.msk.f32.mxu1 %vm2107_vm1, %v2106_v12 }
 0x830   :  { %1913 = vmatmul.mubr.msk.f32.vlgmr.msra.gmra.mxu0 %vm333_vm2, %v1351_v59 }
 0x831   :  { %1922 = vmatprep.mubr.msk.f32.mxu0 %vm2107_vm1, %v2106_v12 }
 0x8e8   :  { %v1335_v60 = vpop.f32.mrf.mxu1 }
 0x8ea   :  { %v1909_v61 = vpop.f32.mrf.mxu1 }
 0x8eb   :  { %v1731_v61 = vsub.s32 3, %v2209_v48 }
 0x8ec   :  { %v1259_v62 = vpop.f32.mrf.mxu0  ;;  %v1502_v63 = vpop.f32.mrf.mxu1 }
 0x8ed   :  { %v1507_v0 = vmul.f32 0.35355338, %v1502_v63 }
 0x8ee   :  { %v1904_v1 = vpop.f32.mrf.mxu0  ;;  %v1919_v3 = vpop.f32.mrf.mxu1 }
 0x8ef   :  { %v1511_v4 = vsel %vm333_vm2, %v1507_v0, -inf  ;;  %v1732_v1 = vrot.slane %v2219_v55, %v1731_v61 }
 0x8f0   :  { %1512 = vmax.xlane.f32.xlu1 %v1511_v4  ;;  %v1424_v6 = vpop.f32.mrf.mxu0 }
 0x8f1   :  { %v1506_v7 = vmul.f32 0.35355338, %v1424_v6 }
 0x8f2   :  { %v1914_v8 = vpop.f32.mrf.mxu0 }
 0x8f3   :  { %v1508_v9 = vsel %vm333_vm2, %v1506_v7, -inf }
 0x8f4   :  { %1509 = vmax.xlane.f32.xlu0 %v1508_v9 }
 0x901   :  { %1606 = vrot.lane.b32.xlu1 %v2237_v13, %s2114_s23 }
 0x905   :  { %998 = vrot.lane.b32.xlu1 %v2319_v28, %s2103_s27 }
 0x909   :  { %1000 = vrot.lane.b32.xlu1 %v2317_v26, %s2103_s27 }
 0x90d   :  { %1343 = vrot.lane.b32.xlu1 %v1335_v60, %s2115_s24  ;;  %v1725_v60 = vsub.s32 2, %v2209_v48 }
 0x979   :  { %v1513_v12 = vpop.xlane.xlu1 %1512 }
 0x97a   :  { %v1515_v10 = vsub.f32 %v1507_v0, %v1513_v12 }
 0x97c   :  { %v1518_v11 = vmul.f32 1.442695, %v1515_v10 }
 0x97d   :  { %v1607_v17 = vpop.permute.xlu1 %1606  ;;  %v1510_v18 = vpop.xlane.xlu0 %1509 }
 0x97e   :  { %1980 = vpow2.f32 %v1518_v11  ;;  %v1514_v19 = vsub.f32 %v1506_v7, %v1510_v18  ;;  %1926 = vmatpush3.msra.mxu1 %v1607_v17 }
 0x980   :  { %v1516_v20 = vmul.f32 1.442695, %v1514_v19 }
 0x981   :  { %v999_v21 = vpop.permute.xlu1 %998 }
 0x982   :  { %1982 = vpow2.f32 %v1516_v20  ;;  %1005 = vst.msk [vmem:[#allocation2] sm:$0xff] %vm1004_vm3, %v999_v21 }
 0x985   :  { %v1001_v13 = vpop.permute.xlu1 %1000 }
 0x986   :  { %1006 = vst.msk [vmem:[#allocation2 + $0x8] sm:$0xff] %vm1004_vm3, %v1001_v13 }
 0x989   :  { %v1344_v22 = vpop.permute.xlu1 %1343 }
 0x98a   :  { %1349 = vst.msk [vmem:[#allocation2 + $0x8] sm:$0xff] %vm1347_vm4, %v1344_v22 }
 0x98b   :  { %v1981_v23 = vpop.eup %1980 }
 0x98c   :  { %v1523_v24 = vsel %vm333_vm2, %v1981_v23, 0.0 }
 0x98d   :  { %1524 = vadd.xlane.f32.xlu0 %v1523_v24 }
 0x98f   :  { %v1983_v25 = vpop.eup %1982 }
 0x990   :  { %v1520_v26 = vsel %vm333_vm2, %v1983_v25, 0.0 }
 0x991   :  { %1521 = vadd.xlane.f32.xlu0 %v1520_v26 }
 0x9a7   :  { %1530 = vrot.lane.b32.xlu0 %v2241_v14, %s2114_s23 }
 0x9ab   :  { %1341 = vrot.lane.b32.xlu0 %v1259_v62, %s2115_s24  ;;  %v1726_v62 = vrot.slane %v2219_v55, %v1725_v60 }
 0xa16   :  { %v1525_v27 = vpop.xlane.xlu0 %1524 }
 0xa17   :  { %1984 = vrcp.f32 %v1525_v27 }
 0xa1a   :  { %v1522_v28 = vpop.xlane.xlu0 %1521 }
 0xa1b   :  { %1986 = vrcp.f32 %v1522_v28 }
 0xa1e   :  { %v1531_v29 = vpop.permute.xlu0 %1530 }
 0xa1f   :  { %1921 = vmatpush3.msra.mxu0 %v1531_v29 }
 0xa22   :  { %v1342_v30 = vpop.permute.xlu0 %1341 }
 0xa23   :  { %1348 = vst.msk [vmem:[#allocation2] sm:$0xff] %vm1347_vm4, %v1342_v30 }
 0xa24   :  { %v1985_v31 = vpop.eup %1984 }
 0xa25   :  { %v1529_v32 = vmul.f32 %v1985_v31, %v1981_v23 }
 0xa27   :  { %1928 = vmatmul.mubr.msk.f32.vlgmr.msra.gmra.mxu1 %vm333_vm2, %v1529_v32 }
 0xa28   :  { %v1987_v33 = vpop.eup %1986 }
 0xa29   :  { %v1528_v34 = vmul.f32 %v1987_v33, %v1983_v25 }
 0xa2b   :  { %1923 = vmatmul.mubr.msk.f32.vlgmr.msra.gmra.mxu0 %vm333_vm2, %v1528_v34 }
 0xae7   :  { %v1678_v35 = vpop.f32.mrf.mxu1 }
 0xae8   :  { %1686 = vrot.lane.b32.xlu1 %v1678_v35, %s2116_s25 }
 0xae9   :  { %v1929_v14 = vpop.f32.mrf.mxu1 }
 0xaeb   :  { %v1602_v36 = vpop.f32.mrf.mxu0 }
 0xaec   :  { %1684 = vrot.lane.b32.xlu0 %v1602_v36, %s2116_s25 }
 0xaed   :  { %v1924_v37 = vpop.f32.mrf.mxu0 }
 0xb5a   :  { %v1687_v38 = vpop.permute.xlu1 %1686 }
 0xb5b   :  { %1692 = vst.msk [vmem:[#allocation2 + $0x8] sm:$0xff] %vm1690_vm5, %v1687_v38 }
 0xb5e   :  { %v1685_v39 = vpop.permute.xlu0 %1684 }
 0xb5f   :  { %1691 = vst.msk [vmem:[#allocation2] sm:$0xff] %vm1690_vm5, %v1685_v39 }
 0xb62   :  { %v1694_v40 = vld [vmem:[#allocation2 + $0x8] sm:$0xff] }
 0xb63   :  { %v1696_v41 = vadd.f32 %v1694_v40, %v2182_v5 }
 0xb65   :  { %v1700_v42 = vsel %vm85_vm0, %v1696_v41, 0.0 }
 0xb66   :  { %1701 = vadd.xlane.f32.xlu1 %v1700_v42  ;;  %v1693_v43 = vld [vmem:[#allocation2] sm:$0xff] }
 0xb67   :  { %v1695_v44 = vadd.f32 %v1693_v43, %v2177_v2 }
 0xb69   :  { %v1697_v45 = vsel %vm85_vm0, %v1695_v44, 0.0 }
 0xb6a   :  { %1698 = vadd.xlane.f32.xlu0 %v1697_v45 }
 0xbef   :  { %v1702_v46 = vpop.xlane.xlu1 %1701 }
 0xbf0   :  { %v1704_v47 = vmul.f32 0.03125, %v1702_v46 }
 0xbf2   :  { %v1706_v50 = vsub.f32 %v1696_v41, %v1704_v47 }
 0xbf3   :  { %v1699_v49 = vpop.xlane.xlu0 %1698 }
 0xbf4   :  { %v1703_v15 = vmul.f32 0.03125, %v1699_v49  ;;  %v1708_v54 = vmul.f32 %v1706_v50, %v1706_v50 }
 0xbf6   :  { %v1705_v51 = vsub.f32 %v1695_v44, %v1703_v15  ;;  %v1712_v5 = vsel %vm85_vm0, %v1708_v54, 0.0 }
 0xbf8   :  { %v1707_v52 = vmul.f32 %v1705_v51, %v1705_v51 }
 0xbfa   :  { %v1709_v53 = vsel %vm85_vm0, %v1707_v52, 0.0 }
 0xbfb   :  { %1710 = vadd.xlane.f32.xlu0 %v1709_v53 }
 0xbff   :  { %1713 = vadd.xlane.f32.xlu0 %v1712_v5 }
 0xc84   :  { %v1711_v56 = vpop.xlane.xlu0 %1710 }
 0xc85   :  { %v1715_v57 = vmul.f32 0.03125, %v1711_v56 }
 0xc87   :  { %v1717_v2 = vadd.f32 1e-05, %v1715_v57 }
 0xc88   :  { %v1714_v16 = vpop.xlane.xlu0 %1713 }
 0xc89   :  { %1988 = vrsqrt.f32 %v1717_v2  ;;  %v1716_v58 = vmul.f32 0.03125, %v1714_v16 }
 0xc8b   :  { %v1718_v59 = vadd.f32 1e-05, %v1716_v58 }
 0xc8d   :  { %1990 = vrsqrt.f32 %v1718_v59 }
 0xc96   :  { %v1989_v63 = vpop.eup %1988 }
 0xc97   :  { %v1721_v0 = vmul.f32 %v1989_v63, %v1705_v51 }
 0xc99   :  { %v1727_v3 = vmul.f32 %v1726_v62, %v1721_v0 }
 0xc9a   :  { %v1991_v4 = vpop.eup %1990 }
 0xc9b   :  { %v1722_v6 = vmul.f32 %v1991_v4, %v1706_v50  ;;  %v1733_v7 = vadd.f32 %v1732_v1, %v1727_v3 }
 0xc9d   :  { %v1728_v8 = vmul.f32 %v1726_v62, %v1722_v6  ;;  %1735 = vst.msk [vmem:[#allocation11] sm:$0xff] %vm85_vm0, %v1733_v7 }
 0xc9f   :  { %v1734_v9 = vadd.f32 %v1732_v1, %v1728_v8 }
 0xca1   :  { %1736 = vst.msk [vmem:[#allocation11 + $0x8] sm:$0xff] %vm85_vm0, %v1734_v9 }
 0xca2   :  { %2083 = shalt.err (!%p2080_p10)
}
 0xca3   :  { %1748 = dma.vmem_to_hbm [thread:$0]  %s1743_s29, 256, %s2387_s6, [#allocation5], %s2102_s26, %s2102_s26, %s2103_s27  }
 0xca4   :  { %2098 = dma.done.wait [#allocation5], 256  }
 0xca5   :  { %2099 = vsyncadd [#allocation5], 4294967040 }
 0xca6   :  { %1752 = vsyncpa [#allocation4], 1 }
 0xca7   :  { %1753 = vsyncpa [#allocation7], 1 }
 0xca8   :  { %1754 = vsyncpa [#allocation10], 1 }
 0xca9   :  { %1755 = vsyncpa [#allocation5], 1 }

</bundles_post_ra>
